<compile_context>
chip_gen: v6e
topology: v6e:2x2x1
jax: 0.10.0
libtpu: 0.0.40
codegen_flags: <defaults>
</compile_context>

<pallas_src>
import math

import jax
import jax.numpy as jnp
from jax.experimental import pallas as pl
from jax.experimental.pallas import tpu as pltpu

# ----------------------------- config (small) -----------------------------
HIDDEN = 128
FFN = 4 * HIDDEN          # 512
BATCH = 2
SEQ = 16


# ----------------------------- Pallas kernel -----------------------------
def _gelu_exact(x):
    # nn.GELU() default = exact (erf-based) GELU.
    return 0.5 * x * (1.0 + jax.lax.erf(x * (1.0 / math.sqrt(2.0))))


def _ffn_kernel(x_ref, w1_ref, b1_ref, w2_ref, b2_ref, o_ref):
    # x: [tm, H], w1: [H, F] bf16, b1: [1, F] f32, w2: [F, H] bf16,
    # b2: [1, H] f32 -> o: [tm, H]
    tm = x_ref.shape[0]
    F = w1_ref.shape[1]
    H = o_ref.shape[1]

    # Chunk the FFN dim only when the row tile is large enough that the full
    # (tm, F) f32 intermediate would spill the vreg file / pressure the store
    # slot; at small tm a single pass is cheapest.
    f_chunk = 256 if (tm >= 128 and F % 256 == 0) else F
    n_chunks = F // f_chunk

    x = x_ref[...].astype(jnp.bfloat16)            # bf16 MXU operand
    acc = jnp.zeros((tm, H), jnp.float32)
    for c in range(n_chunks):                      # static, 1-2 iterations
        f0 = c * f_chunk
        h = jnp.dot(x, w1_ref[:, f0:f0 + f_chunk],
                    preferred_element_type=jnp.float32)
        h = _gelu_exact(h + b1_ref[:, f0:f0 + f_chunk])
        # intermediate_dropout: identity (eval mode)
        acc = acc + jnp.dot(h.astype(jnp.bfloat16),
                            w2_ref[f0:f0 + f_chunk, :],
                            preferred_element_type=jnp.float32)
    y = acc + b2_ref[...]
    # output_dropout: identity (eval mode)
    o_ref[...] = y.astype(o_ref.dtype)


# ----------------------------- kernel wrapper -----------------------------
def bert_feed_forward(x2d, w1, b1, w2, b2, *, block_m=256):
    """Fused Linear -> GELU -> Linear.  x2d: [M, H]; w1: [H, F]; w2: [F, H]."""
    M, H = x2d.shape
    F = w1.shape[1]

    # Row tile: capped by block_m, sublane-aligned (multiple of 8), and sized
    # so the grid has >= 2 steps when M allows (keeps both v7x TCs busy).
    tm = min(block_m, M)
    if M >= 16:
        tm = min(tm, max(8, M // 2))
    tm = max(8, (tm // 8) * 8)

    # Pad M up to a multiple of tm (no monolithic-tile fallback).
    m_pad = pl.cdiv(M, tm) * tm
    x_in = x2d if m_pad == M else jnp.pad(x2d, ((0, m_pad - M), (0, 0)))
    grid = (m_pad // tm,)

    w1 = w1.astype(jnp.bfloat16)
    w2 = w2.astype(jnp.bfloat16)

    cost = pl.CostEstimate(
        flops=2 * m_pad * H * F * 2,               # two matmuls
        transcendentals=m_pad * F,                 # erf
        bytes_accessed=(m_pad * H * 4 * 2          # x in + out (f32)
                        + H * F * 2 + F * H * 2    # bf16 weights
                        + F * 4 + H * 4))          # biases

    out = pl.pallas_call(
        _ffn_kernel,
        out_shape=jax.ShapeDtypeStruct((m_pad, H), x2d.dtype),
        grid=grid,
        in_specs=[
            pl.BlockSpec((tm, H), lambda i: (i, 0)),   # activation row tile
            pl.BlockSpec((H, F), lambda i: (0, 0)),    # W1 resident
            pl.BlockSpec((1, F), lambda i: (0, 0)),    # b1 resident
            pl.BlockSpec((F, H), lambda i: (0, 0)),    # W2 resident
            pl.BlockSpec((1, H), lambda i: (0, 0)),    # b2 resident
        ],
        out_specs=pl.BlockSpec((tm, H), lambda i: (i, 0)),
        compiler_params=pltpu.CompilerParams(
            dimension_semantics=("parallel",),
            vmem_limit_bytes=32 * 1024 * 1024),
        cost_estimate=cost,
    )(x_in, w1, b1.reshape(1, F), w2, b2.reshape(1, H))

    return out[:M] if m_pad != M else out


def bert_feed_forward_layer(params, x):
    # x: [B, S, H] -> [B, S, H]
    B, S, H = x.shape
    y2d = bert_feed_forward(
        x.reshape(B * S, H),
        params["w1"], params["b1"], params["w2"], params["b2"])
    return y2d.reshape(B, S, H)


# ----------------------------- parameter init -----------------------------
def init_params(key):
    k1, k2, k3, k4 = jax.random.split(key, 4)
    std = 0.02
    # Weights pre-transposed to [in_features, out_features] and stored in bf16
    # (MXU operand dtype); biases stay f32.
    return dict(
        w1=(jax.random.normal(k1, (HIDDEN, FFN), jnp.float32) * std
            ).astype(jnp.bfloat16),
        b1=jax.random.normal(k2, (FFN,), jnp.float32) * 0.01,
        w2=(jax.random.normal(k3, (FFN, HIDDEN), jnp.float32) * std
            ).astype(jnp.bfloat16),
        b2=jax.random.normal(k4, (HIDDEN,), jnp.float32) * 0.01,
    )


def reference(params, x):
    # Pure-jnp reference of the PyTorch forward (dropout = identity), f32 math
    # on the same (bf16-valued) weights.
    w1 = params["w1"].astype(jnp.float32)
    w2 = params["w2"].astype(jnp.float32)
    h = jnp.einsum("bsh,hf->bsf", x, w1) + params["b1"]
    h = jax.nn.gelu(h, approximate=False)
    y = jnp.einsum("bsf,fh->bsh", h, w2) + params["b2"]
    return y


# ----------------------------- main -----------------------------
if __name__ == "__main__":
    key = jax.random.PRNGKey(0)
    pkey, xkey = jax.random.split(key)

    params = init_params(pkey)
    x = jax.random.normal(xkey, (BATCH, SEQ, HIDDEN), jnp.float32)

    fwd = jax.jit(bert_feed_forward_layer)
    y = fwd(params, x)
    jax.block_until_ready(y)

    assert y.shape == (BATCH, SEQ, HIDDEN)
    assert bool(jnp.all(jnp.isfinite(y)))

    y_ref = reference(params, x)
    assert bool(jnp.allclose(y, y_ref, atol=2e-2, rtol=2e-2)), \
        float(jnp.max(jnp.abs(y - y_ref)))
    print("KERNEL_OK")
</pallas_src>

<mosaic_0001>
module attributes {stable_mosaic.version = 11 : i64} {
  func.func @_ffn_kernel(%arg0: i32, %arg1: memref<16x128xf32, #tpu.memory_space<vmem>>, %arg2: memref<128x512xbf16, #tpu.memory_space<vmem>>, %arg3: memref<1x512xf32, #tpu.memory_space<vmem>>, %arg4: memref<512x128xbf16, #tpu.memory_space<vmem>>, %arg5: memref<1x128xf32, #tpu.memory_space<vmem>>, %arg6: memref<16x128xf32, #tpu.memory_space<vmem>>) attributes {dimension_semantics = [#tpu.dimension_semantics<parallel>], iteration_bounds = array<i64: 2>, scalar_prefetch = 0 : i64, scratch_operands = 0 : i64, tpu.core_type = #tpu.core_type<tc>, window_params = [{transform_indices = @transform_0, window_bounds = array<i64: 16, 128>}, {pipeline_mode = #tpu.pipeline_mode<synchronous>, transform_indices = @transform_1, window_bounds = array<i64: 128, 512>}, {pipeline_mode = #tpu.pipeline_mode<synchronous>, transform_indices = @transform_2, window_bounds = array<i64: 1, 512>}, {pipeline_mode = #tpu.pipeline_mode<synchronous>, transform_indices = @transform_3, window_bounds = array<i64: 512, 128>}, {pipeline_mode = #tpu.pipeline_mode<synchronous>, transform_indices = @transform_4, window_bounds = array<i64: 1, 128>}, {transform_indices = @transform_5, window_bounds = array<i64: 16, 128>}]} {
    %c0 = arith.constant 0 : index
    %c0_0 = arith.constant 0 : index
    %0 = vector.load %arg1[%c0, %c0_0] : memref<16x128xf32, #tpu.memory_space<vmem>>, vector<16x128xf32>
    %1 = arith.truncf %0 : vector<16x128xf32> to vector<16x128xbf16>
    %cst = arith.constant 0.000000e+00 : f32
    %2 = vector.broadcast %cst : f32 to vector<16x128xf32>
    %c0_1 = arith.constant 0 : index
    %c0_2 = arith.constant 0 : index
    %3 = vector.load %arg2[%c0_1, %c0_2] : memref<128x512xbf16, #tpu.memory_space<vmem>>, vector<128x512xbf16>
    %cst_3 = arith.constant dense<0.000000e+00> : vector<16x512xf32>
    %4 = tpu.matmul %1, %3, %cst_3 {dimension_numbers = #tpu.dot_dimension_numbers<[1], [0], [0], [1], [0, 0, 1, 1], [], []>} : vector<16x128xbf16>, vector<128x512xbf16>, vector<16x512xf32> -> vector<16x512xf32>
    %c0_4 = arith.constant 0 : index
    %c0_5 = arith.constant 0 : index
    %5 = vector.load %arg3[%c0_4, %c0_5] : memref<1x512xf32, #tpu.memory_space<vmem>>, vector<1x512xf32>
    %6 = vector.broadcast %5 : vector<1x512xf32> to vector<16x512xf32>
    %7 = arith.addf %4, %6 : vector<16x512xf32>
    %cst_6 = arith.constant 5.000000e-01 : f32
    %8 = vector.broadcast %cst_6 : f32 to vector<16x512xf32>
    %9 = arith.mulf %8, %7 : vector<16x512xf32>
    %cst_7 = arith.constant 0.707106769 : f32
    %10 = vector.broadcast %cst_7 : f32 to vector<16x512xf32>
    %11 = arith.mulf %7, %10 : vector<16x512xf32>
    %12 = math.erf %11 : vector<16x512xf32>
    %cst_8 = arith.constant 1.000000e+00 : f32
    %13 = vector.broadcast %cst_8 : f32 to vector<16x512xf32>
    %14 = arith.addf %13, %12 : vector<16x512xf32>
    %15 = arith.mulf %9, %14 : vector<16x512xf32>
    %16 = arith.truncf %15 : vector<16x512xf32> to vector<16x512xbf16>
    %c0_9 = arith.constant 0 : index
    %c0_10 = arith.constant 0 : index
    %17 = vector.load %arg4[%c0_9, %c0_10] : memref<512x128xbf16, #tpu.memory_space<vmem>>, vector<512x128xbf16>
    %cst_11 = arith.constant dense<0.000000e+00> : vector<16x128xf32>
    %18 = tpu.matmul %16, %17, %cst_11 {dimension_numbers = #tpu.dot_dimension_numbers<[1], [0], [0], [1], [0, 0, 1, 1], [], []>} : vector<16x512xbf16>, vector<512x128xbf16>, vector<16x128xf32> -> vector<16x128xf32>
    %19 = arith.addf %2, %18 : vector<16x128xf32>
    %c0_12 = arith.constant 0 : index
    %c0_13 = arith.constant 0 : index
    %20 = vector.load %arg5[%c0_12, %c0_13] : memref<1x128xf32, #tpu.memory_space<vmem>>, vector<1x128xf32>
    %21 = vector.broadcast %20 : vector<1x128xf32> to vector<16x128xf32>
    %22 = arith.addf %19, %21 : vector<16x128xf32>
    %c0_14 = arith.constant 0 : index
    %c0_15 = arith.constant 0 : index
    %23 = vector.load %arg6[%c0_14, %c0_15] : memref<16x128xf32, #tpu.memory_space<vmem>>, vector<16x128xf32>
    tpu.vector_store %arg6[%c0_14, %c0_15], %22 {strides = array<i32>} : memref<16x128xf32, #tpu.memory_space<vmem>>, vector<16x128xf32>,
    return
  }
  func.func @transform_0(%arg0: i32) -> (i32, i32) {
    %c0_i32 = arith.constant 0 : i32
    %c0_i32_0 = arith.constant 0 : i32
    return %arg0, %c0_i32 : i32, i32
  }
  func.func @transform_1(%arg0: i32) -> (i32, i32) {
    %c0_i32 = arith.constant 0 : i32
    %c0_i32_0 = arith.constant 0 : i32
    %c0_i32_1 = arith.constant 0 : i32
    return %c0_i32, %c0_i32_0 : i32, i32
  }
  func.func @transform_2(%arg0: i32) -> (i32, i32) {
    %c0_i32 = arith.constant 0 : i32
    %c0_i32_0 = arith.constant 0 : i32
    %c0_i32_1 = arith.constant 0 : i32
    return %c0_i32, %c0_i32_0 : i32, i32
  }
  func.func @transform_3(%arg0: i32) -> (i32, i32) {
    %c0_i32 = arith.constant 0 : i32
    %c0_i32_0 = arith.constant 0 : i32
    %c0_i32_1 = arith.constant 0 : i32
    return %c0_i32, %c0_i32_0 : i32, i32
  }
  func.func @transform_4(%arg0: i32) -> (i32, i32) {
    %c0_i32 = arith.constant 0 : i32
    %c0_i32_0 = arith.constant 0 : i32
    %c0_i32_1 = arith.constant 0 : i32
    return %c0_i32, %c0_i32_0 : i32, i32
  }
  func.func @transform_5(%arg0: i32) -> (i32, i32) {
    %c0_i32 = arith.constant 0 : i32
    %c0_i32_0 = arith.constant 0 : i32
    return %arg0, %c0_i32 : i32, i32
  }
}

</mosaic_0001>

<bundles_post_ra>
// kernel: bert_feed_forward_layer.1
= control target key start
LH: loop header
LB: loop body
LE: loop exit
PB: predicated region body
PF: predicated region fallthrough
CT: control target
= control target key end

     0   :  { %10 = vsyncpa [#allocation3], 0  ;;  %s1771_s0 = inlined_call_operand.hbm [shape: f32[32,128], index: 0, kind: input, shape index: {}]   ;;  %s1772_s1 = inlined_call_operand.hbm [shape: bf16[128,512], index: 1, kind: input, shape index: {}]   ;;  %s1773_s2 = inlined_call_operand.vmem [shape: f32[1,512], index: 2, kind: input, shape index: {}]   ;;  %s1774_s3 = inlined_call_operand.hbm [shape: bf16[512,128], index: 3, kind: input, shape index: {}]   ;;  %s1775_s4 = inlined_call_operand.vmem [shape: f32[1,128], index: 4, kind: input, shape index: {}]   ;;  %s1776_s5 = inlined_call_operand.hbm [shape: f32[32,128], index: 5, kind: output, shape index: {}]  }
   0x1   :  { %12 = vsyncpa [#allocation3 + $0x1], 0 }
   0x2   :  { %13 = vsyncpa [#allocation6], 0 }
   0x3   :  { %14 = vsyncpa [#allocation4], 0 }
   0x4   :  { %16 = vsyncpa [#allocation4 + $0x1], 0  ;;  %s1569_s18 = smov 0   ;;  %s1571_s19 = smov 0  }
   0x5   :  { %s1573_s20 = smov 0   ;;  %s1575_s21 = smov 0  }
   0x6 LB: > { %s1590_s22 = sadd.s32 4294967295, %s1524_s21   ;;  %s1075_s23 = sadd.s32 4294967294, %s1524_s21   ;;  %s1524_s21 = sphi %s1575_s21, %s1798_s21   ;;  %s1520_s20 = sphi %s1573_s20, %s1797_s20   ;;  %s1516_s19 = sphi %s1571_s19, %s1796_s19   ;;  %s1512_s18 = sphi %s1569_s18, %s1795_s18  }
   0x7   : > { %p42_p0 = scmp.ne.s32.totalorder %s1516_s19, %s1512_s18  ;;  %p1777_p1 = scmp.eq.s32.totalorder %s1590_s22, 0 }
   0x8   : > { %p156_p3 = scmp.eq.s32.totalorder %s1075_s23, 1  ;;  %p1076_p5 = scmp.ge.s32.totalorder %s1524_s21, 1 }
   0x9   : > { %p1599_p4 = por %p1777_p1, %p42_p0  ;;  %p163_p7 = scmp.lt.s32.totalorder %s1524_s21, 3 }
   0xa   : > { %p1604_p6 = por %p156_p3, %p42_p0  ;;  %s1526_s27 = smov [#allocation5]  }
   0xb   : > { %s1781_s24 = scalar_select %p1599_p4, 1, 0 }
   0xc   : > { %s1782_s25 = scalar_select %p1604_p6, 1, 0 }
   0xd   : > { %p1609_p8 = pnand %p1076_p5, %p163_p7  ;;  %s175_s28 = sshll.u32 %s1526_s27, 4  ;;  %s176_s28 = int_to_ptr.vmem [resolvable:$true] %s175_s28 }
   0xe   : > { %s1527_s30 = smov [#allocation7]   ;;  %s1387_s7 = scalar_lea.vmem %s176_s28, 4096 }
   0xf   : > { %s1783_s26 = scalar_select %p1609_p8, 1, 0 }
  0x10   : > { %p1216_p9 = pneg %p1609_p8  ;;  %s191_s6 = sshll.u32 %s1527_s30, 4  ;;  %s192_s6 = int_to_ptr.vmem [resolvable:$true] %s191_s6 }
  0x11   : > { %p1388_p13 = scmp.ne.s32.totalorder %s176_s28, %s1387_s7  ;;  %p1395_p5 = scmp.lt.s32.totalorder %s176_s28, %s176_s28 }
  0x12   : > { %p1618_p11 = pnand %p1216_p9, %p1777_p1  ;;  %p1396_p7 = scmp.lt.s32.totalorder %s1387_s7, %s1387_s7 }
  0x14   : > { %p1378_p12 = pneg %p1618_p11  ;;  %p1397_p10 = por %p1396_p7, %p1395_p5 }
  0x16   : > { %p1390_p0 = pnand %p1388_p13, %p1378_p12 }
  0x18   : > { %p1391_p3 = pneg %p1390_p0 }
  0x1a   : > { %p1398_p9 = pnand %p1397_p10, %p1391_p3 }
  0x1c   : > { %1401 = shalt.err (!%p1398_p9)
}
  0x1d   : > { %s1528_s8 = smov 256   ;;  %s1529_s9 = smov 16  }
  0x1e   : > { %1219 = dma.hbm_to_vmem [thread:$0]  (!%p1618_p11), %s1772_s1, 4096, %s176_s28, [#allocation6], %s1528_s8, %s1528_s8, %s1529_s9  }
  0x1f   : > { %s1413_s12 = scalar_lea.vmem %s192_s6, 4096  ;;  %p1421_p2 = scmp.lt.s32.totalorder %s192_s6, %s192_s6 }
  0x20   : > { %p1414_p1 = scmp.ne.s32.totalorder %s192_s6, %s1413_s12  ;;  %p1422_p6 = scmp.lt.s32.totalorder %s1413_s12, %s1413_s12 }
  0x22   : > { %p1416_p13 = pnand %p1414_p1, %p1378_p12  ;;  %p1423_p5 = por %p1422_p6, %p1421_p2 }
  0x24   : > { %p1417_p0 = pneg %p1416_p13 }
  0x26   : > { %p1424_p10 = pnand %p1423_p5, %p1417_p0 }
  0x28   : > { %1427 = shalt.err (!%p1424_p10)
}
  0x29   : > { %s1530_s13 = smov 64   ;;  %s1531_s14 = smov 4  }
  0x2a   : > { %1222 = dma.hbm_to_vmem [thread:$0]  (!%p1618_p11), %s1774_s3, 4096, %s192_s6, [#allocation6], %s1530_s13, %s1530_s13, %s1531_s14  }
  0x2b   : > { %s1641_s17 = sadd.s32 1, %s1524_s21   ;;  %s29_s27 = sadd.s32 1, %s1520_s20 }
  0x2c   : > { %s26_s23 = ssub.s32 %s1524_s21, %s1641_s17  ;;  %p36_p2 = scmp.ne.s32.totalorder %s1520_s20, %s1516_s19 }
  0x2d   : > { %p27_p1 = scmp.eq.s32.totalorder %s26_s23, 0  ;;  %p37_p6 = scmp.eq.s32.totalorder %s1524_s21, 0 }
  0x2e   : > { %p1785_p3 = scmp.eq.s32.totalorder %s1590_s22, 1  ;;  %p1233_p9 = scmp.lt.s32.totalorder %s1524_s21, 2 }
  0x2f   : > { %s1650_s28 = scalar_select %p27_p1, %s1520_s20, %s29_s27  }
  0x30   : > { %p38_p12 = por %p37_p6, %p36_p2  ;;  %p1654_p7 = por %p1785_p3, %p36_p2 }
  0x31   : > { %s208_s29 = sand.u32 1, %s1520_s20   ;;  %s1158_s6 = sshll.u32 %s1524_s21, 8 }
  0x32   : > { %s1786_s30 = scalar_select %p1654_p7, 1, 0 }
  0x33   : > { %s1080_s7 = sshll.u32 %s208_s29, 4  ;;  %s1664_s10 = scalar_lea.hbm %s1771_s0, %s1158_s6 }
  0x34   : > { %s212_s11 = scalar_lea.vmem [#allocation2], %s1080_s7  ;;  %p1668_p11 = pnand %p1233_p9, %p38_p12 }
  0x35   : > { %s219_s12 = sshll.u32 %s212_s11, 4  ;;  %s1672_s14 = scalar_lea.sflag [#allocation3], %s208_s29  ;;  %s1666_s12 = int_to_ptr.vmem [resolvable:$true] %s219_s12 }
  0x36   : > { %s1428_s15 = scalar_lea.hbm %s1664_s10, 256  ;;  %p1430_p0 = pneg %p1668_p11 }
  0x37   : > { %p1429_p13 = scmp.ne.s32.totalorder %s1664_s10, %s1428_s15  ;;  %s1433_s27 = scalar_lea.hbm %s1771_s0, 512 }
  0x38   : > { %p1434_p1 = scmp.lt.s32.totalorder %s1664_s10, %s1771_s0  ;;  %p1435_p2 = scmp.lt.s32.totalorder %s1433_s27, %s1428_s15 }
  0x39   : > { %p1431_p5 = pnand %p1430_p0, %p1429_p13 }
  0x3a   : > { %p1436_p6 = por %p1435_p2, %p1434_p1 }
  0x3b   : > { %p1432_p10 = pneg %p1431_p5 }
  0x3d   : > { %p1437_p12 = pnand %p1436_p6, %p1432_p10 }
  0x3f   : > { %1440 = shalt.err (!%p1437_p12)
}
  0x40   : > { %s1441_s29 = scalar_lea.vmem %s1666_s12, 256  ;;  %s1532_s8 = smov [#allocation2]  }
  0x41   : > { %p1442_p3 = scmp.ne.s32.totalorder %s1666_s12, %s1441_s29  ;;  %s1446_s9 = sshll.u32 %s1532_s8, 4  ;;  %s1447_s9 = int_to_ptr.vmem [resolvable:$false] %s1446_s9 }
  0x42   : > { %s1448_s11 = scalar_lea.vmem %s1447_s9, 512  ;;  %p1449_p5 = scmp.lt.s32.totalorder %s1666_s12, %s1447_s9 }
  0x43   : > { %p1444_p9 = pnand %p1442_p3, %p1430_p0  ;;  %p1450_p7 = scmp.lt.s32.totalorder %s1448_s11, %s1441_s29 }
  0x45   : > { %p1445_p13 = pneg %p1444_p9  ;;  %p1451_p4 = por %p1450_p7, %p1449_p5 }
  0x47   : > { %p1452_p8 = pnand %p1451_p4, %p1445_p13 }
  0x49   : > { %1455 = shalt.err (!%p1452_p8)
}
  0x4a   : > { %s1533_s15 = smov 128   ;;  %s1534_s16 = smov 8  }
  0x4b   : > { %1226 = dma.hbm_to_vmem [thread:$0]  (!%p1668_p11), %s1664_s10, 256, %s1666_s12, %s1672_s14, %s1533_s15, %s1533_s15, %s1534_s16  }
  0x4c   : > { %p1788_p0 = scmp.ne.s32.totalorder %s1783_s26, 0 }
  0x4d   : > { %s1696_s23 = sand.u32 (!%p1788_p0), 1, %s1516_s19   ;;  %p1789_p4 = scmp.ne.s32.totalorder (!%p1788_p0), %s1781_s24, 0 }
  0x4e   : > { %231 = sbr.rel (%p1788_p0) target bundleno = 564 (0x234), region = 40  ;;  %s1084_s27 = sshll.u32 (!%p1788_p0), %s1696_s23, 4 }
  0x4f   : > { %s234_s7 = scalar_lea.sflag (!%p1788_p0), [#allocation3], %s1696_s23  ;;  %s1702_s6 = scalar_lea.vmem (!%p1788_p0), [#allocation2], %s1084_s27 }
  0x53   : > { %1499 = dma.done.wait (%p1789_p4), %s234_s7, 256  }
  0x54   : > { %1501 = vsyncadd (%p1789_p4), %s234_s7, 4294967040  ;;  %p1790_p8 = scmp.eq.s32.totalorder %s1590_s22, 0 }
  0x56   : > { %1503 = dma.done.wait (%p1790_p8), [#allocation6], 8192   ;;  %p1791_p7 = pmov %p1790_p8 }
  0x57   : > { %v1535_v0 = vmov 0   ;;  %v1280_v1 = vld [vmem:[#allocation5 + $0xe4] ss:$16 sps:$4 sm:$0xff]   ;;  %v1282_v2 = vld [vmem:[#allocation5 + $0xec] ss:$16 sps:$4 sm:$0xff]   ;;  %s271_s13 = scalar_lea.vmem [#allocation8], %s1084_s27 }
  0x58   : > { %1505 = vsyncadd (%p1791_p7), [#allocation6], 4294959104  ;;  %524 = vmatprep.mubr.bf16.mxu0 %v1535_v0  ;;  %567 = vmatprep.mubr.bf16.mxu1 %v1535_v0  ;;  %v1284_v3 = vld [vmem:[#allocation5 + $0xe0] ss:$16 sps:$4 sm:$0xff]   ;;  %v1285_v4 = vld [vmem:[#allocation5 + $0xe8] ss:$16 sps:$4 sm:$0xff]  }
  0x59   : > { %492 = vmatprep.subr.bf16.mxu0 %v1280_v1  ;;  %535 = vmatprep.subr.bf16.mxu1 %v1282_v2  ;;  %v1286_v5 = vld [vmem:[#allocation5 + $0xc4] ss:$16 sps:$4 sm:$0xff]   ;;  %v1288_v6 = vld [vmem:[#allocation5 + $0xcc] ss:$16 sps:$4 sm:$0xff]   ;;  %v1290_v7 = vld [vmem:[#allocation5 + $0xc0] ss:$16 sps:$4 sm:$0xff]  }
  0x5a   : > { %493 = vmatpush1.bf16.msra.mxu0 %v1284_v3  ;;  %536 = vmatpush1.bf16.msra.mxu1 %v1285_v4  ;;  %v1291_v8 = vld [vmem:[#allocation5 + $0xc8] ss:$16 sps:$4 sm:$0xff]   ;;  %v1292_v9 = vld [vmem:[#allocation5 + $0xa4] ss:$16 sps:$4 sm:$0xff]   ;;  %v1294_v10 = vld [vmem:[#allocation5 + $0xac] ss:$16 sps:$4 sm:$0xff]   ;;  %v312_v4 = vlaneseq }
  0x5b   : > { %494 = vmatprep.subr.bf16.mxu0 %v1286_v5  ;;  %537 = vmatprep.subr.bf16.mxu1 %v1288_v6  ;;  %v1296_v11 = vld [vmem:[#allocation5 + $0xa0] ss:$16 sps:$4 sm:$0xff]   ;;  %v1297_v12 = vld [vmem:[#allocation5 + $0xa8] ss:$16 sps:$4 sm:$0xff]   ;;  %v1298_v13 = vld [vmem:[#allocation5 + $0x84] ss:$16 sps:$4 sm:$0xff]  }
  0x5c   : > { %v1300_v14 = vld [vmem:[#allocation5 + $0x8c] ss:$16 sps:$4 sm:$0xff]   ;;  %v1302_v15 = vld [vmem:[#allocation5 + $0x80] ss:$16 sps:$4 sm:$0xff]   ;;  %v1303_v16 = vld [vmem:[#allocation5 + $0x88] ss:$16 sps:$4 sm:$0xff]  }
  0x5d   : > { %v1304_v17 = vld [vmem:[#allocation5 + $0x64] ss:$16 sps:$4 sm:$0xff]   ;;  %v1306_v18 = vld [vmem:[#allocation5 + $0x6c] ss:$16 sps:$4 sm:$0xff]   ;;  %v1308_v19 = vld [vmem:[#allocation5 + $0x60] ss:$16 sps:$4 sm:$0xff]  }
  0x5e   : > { %495 = vmatpush1.bf16.msra.mxu0 %v1290_v7  ;;  %538 = vmatpush1.bf16.msra.mxu1 %v1291_v8  ;;  %v1309_v20 = vld [vmem:[#allocation5 + $0x68] ss:$16 sps:$4 sm:$0xff]   ;;  %v1310_v21 = vld [vmem:[#allocation5 + $0x44] ss:$16 sps:$4 sm:$0xff]   ;;  %v1312_v22 = vld [vmem:[#allocation5 + $0x4c] ss:$16 sps:$4 sm:$0xff]  }
  0x5f   : > { %496 = vmatprep.subr.bf16.mxu0 %v1292_v9  ;;  %539 = vmatprep.subr.bf16.mxu1 %v1294_v10  ;;  %v1314_v23 = vld [vmem:[#allocation5 + $0x40] ss:$16 sps:$4 sm:$0xff]   ;;  %v1315_v24 = vld [vmem:[#allocation5 + $0x48] ss:$16 sps:$4 sm:$0xff]   ;;  %v1316_v25 = vld [vmem:[#allocation5 + $0x24] ss:$16 sps:$4 sm:$0xff]  }
  0x60   : > { %v1318_v26 = vld [vmem:[#allocation5 + $0x2c] ss:$16 sps:$4 sm:$0xff]   ;;  %v1320_v27 = vld [vmem:[#allocation5 + $0x20] ss:$16 sps:$4 sm:$0xff]   ;;  %v1321_v28 = vld [vmem:[#allocation5 + $0x28] ss:$16 sps:$4 sm:$0xff]  }
  0x61   : > { %v1322_v29 = vld [vmem:[#allocation5 + $0x4] ss:$16 sps:$4 sm:$0xff]   ;;  %v1324_v30 = vld [vmem:[#allocation5 + $0xc] ss:$16 sps:$4 sm:$0xff]   ;;  %v1326_v31 = vld [vmem:[#allocation5] ss:$16 sps:$4 sm:$0xff]  }
  0x62   : > { %497 = vmatpush1.bf16.msra.mxu0 %v1296_v11  ;;  %540 = vmatpush1.bf16.msra.mxu1 %v1297_v12  ;;  %v1327_v32 = vld [vmem:[#allocation5 + $0x8] ss:$16 sps:$4 sm:$0xff]   ;;  %v275_v33 = vld [vmem:[%s1702_s6] sm:$0xff]  ;;  %v313_v5 = vshrl.u32 %v312_v4, 7  ;;  %s983_s14 = sshll.u32 %s271_s13, 4  ;;  %s1159_s29 = sshll.u32 %s1590_s22, 8  ;;  %s1723_s14 = int_to_ptr.vmem [resolvable:$true] %s983_s14 }
  0x63   : > { %498 = vmatprep.subr.bf16.mxu0 %v1298_v13  ;;  %541 = vmatprep.subr.bf16.mxu1 %v1300_v14  ;;  %v276_v34 = vld [vmem:[%s1702_s6 + $0x8] sm:$0xff]  ;;  %v1332_v40 = vld [vmem:[#allocation7 + $0x70] sm:$0xff]   ;;  %v1340_v48 = vld [vmem:[#allocation7 + $0x60] sm:$0xff]   ;;  %s1728_s11 = scalar_lea.hbm %s1776_s5, %s1159_s29  ;;  %s970_s15 = scalar_lea.sflag [#allocation4], %s1696_s23 }
  0x64   : > { %v277_v35 = vpack.c.bf16 %v276_v34, %v275_v33  ;;  %v1328_v36 = vld [vmem:[#allocation7 + $0x78] sm:$0xff]   ;;  %v1333_v41 = vld [vmem:[#allocation7 + $0xf0] sm:$0xff]   ;;  %v1336_v44 = vld [vmem:[#allocation7 + $0x68] sm:$0xff]   ;;  %v314_v6 = vsub.s32 0, %v313_v5  ;;  %v322_v7 = vsub.s32 2, %v313_v5  ;;  %v318_v9 = vsub.s32 1, %v313_v5 }
  0x65   : > { %v1329_v37 = vld [vmem:[#allocation7 + $0xf8] sm:$0xff]   ;;  %v1334_v42 = vld [vmem:[#allocation7 + $0x30] sm:$0xff]   ;;  %v1337_v45 = vld [vmem:[#allocation7 + $0xe8] sm:$0xff]   ;;  %v326_v10 = vsub.s32 3, %v313_v5  ;;  %s1456_s16 = scalar_lea.vmem %s1723_s14, 256  ;;  %p1792_p10 = scmp.ne.s32.totalorder %s1786_s30, 0 }
  0x66   : > { %499 = vmatpush1.bf16.msra.mxu0 %v1302_v15  ;;  %542 = vmatpush1.bf16.msra.mxu1 %v1303_v16  ;;  %v1330_v38 = vld [vmem:[#allocation7 + $0x38] sm:$0xff]   ;;  %v1335_v43 = vld [vmem:[#allocation7 + $0xb0] sm:$0xff]   ;;  %v1338_v46 = vld [vmem:[#allocation7 + $0x28] sm:$0xff]   ;;  %p1457_p11 = scmp.ne.s32.totalorder %s1723_s14, %s1456_s16  ;;  %s1536_s22 = smov [#allocation8]  }
  0x67   : > { %500 = vmatprep.subr.bf16.mxu0 %v1304_v17  ;;  %543 = vmatprep.subr.bf16.mxu1 %v1306_v18  ;;  %v1331_v39 = vld [vmem:[#allocation7 + $0xb8] sm:$0xff]   ;;  %v1339_v47 = vld [vmem:[#allocation7 + $0xa8] sm:$0xff]   ;;  %v1341_v49 = vld [vmem:[#allocation7 + $0xe0] sm:$0xff]   ;;  %s1460_s27 = sshll.u32 %s1536_s22, 4  ;;  %s1461_s27 = int_to_ptr.vmem [resolvable:$false] %s1460_s27 }
  0x68   : > { %v1342_v50 = vld [vmem:[#allocation7 + $0x20] sm:$0xff]   ;;  %v1344_v52 = vld [vmem:[#allocation7 + $0x58] sm:$0xff]   ;;  %v1348_v56 = vld [vmem:[#allocation7 + $0x50] sm:$0xff]   ;;  %p1458_p1 = pnand %p1457_p11, %p1792_p10  ;;  %s1462_s7 = scalar_lea.vmem %s1461_s27, 512 }
  0x69   : > { %v1343_v51 = vld [vmem:[#allocation7 + $0xa0] sm:$0xff]   ;;  %v1345_v53 = vld [vmem:[#allocation7 + $0xd8] sm:$0xff]   ;;  %v1349_v57 = vld [vmem:[#allocation7 + $0xd0] sm:$0xff]   ;;  %p1463_p6 = scmp.lt.s32.totalorder %s1723_s14, %s1461_s27  ;;  %p1464_p12 = scmp.lt.s32.totalorder %s1462_s7, %s1456_s16 }
  0x6a   : > { %501 = vmatpush1.bf16.msra.mxu0 %v1308_v19  ;;  %544 = vmatpush1.bf16.msra.mxu1 %v1309_v20  ;;  %v1346_v54 = vld [vmem:[#allocation7 + $0x18] sm:$0xff]   ;;  %v1350_v58 = vld [vmem:[#allocation7 + $0x10] sm:$0xff]   ;;  %v1352_v60 = vld [vmem:[#allocation7 + $0x48] sm:$0xff]   ;;  %p1459_p2 = pneg %p1458_p1 }
  0x6b   : > { %502 = vmatprep.subr.bf16.mxu0 %v1310_v21  ;;  %545 = vmatprep.subr.bf16.mxu1 %v1312_v22  ;;  %v1347_v55 = vld [vmem:[#allocation7 + $0x98] sm:$0xff]   ;;  %v1351_v59 = vld [vmem:[#allocation7 + $0x90] sm:$0xff]   ;;  %v1353_v61 = vld [vmem:[#allocation7 + $0xc8] sm:$0xff]   ;;  %p1465_p3 = por %p1464_p12, %p1463_p6 }
  0x6c   : > { %v1354_v62 = vld [vmem:[#allocation7 + $0x8] sm:$0xff]   ;;  %v1356_v0 = vld [vmem:[#allocation7 + $0x40] sm:$0xff]  }
  0x6d   : > { %v1355_v63 = vld [vmem:[#allocation7 + $0x88] sm:$0xff]   ;;  %v1357_v1 = vld [vmem:[#allocation7 + $0xc0] sm:$0xff]   ;;  %p1466_p9 = pnand %p1465_p3, %p1459_p2 }
  0x6e   : > { %503 = vmatpush1.bf16.msra.mxu0 %v1314_v23  ;;  %546 = vmatpush1.bf16.msra.mxu1 %v1315_v24  ;;  %v1358_v2 = vld [vmem:[#allocation7] sm:$0xff]  }
  0x6f   : > { %504 = vmatprep.subr.bf16.mxu0 %v1316_v25  ;;  %547 = vmatprep.subr.bf16.mxu1 %v1318_v26  ;;  %v1359_v3 = vld [vmem:[#allocation7 + $0x80] sm:$0xff]  }
  0x70   : > { %v310_v8 = vld [vmem:[%s1773_s2] sm:$0xf] }
  0x71   : > { %v315_v11 = vrot.slane %v310_v8, %v314_v6  ;;  %v323_v12 = vrot.slane %v310_v8, %v322_v7  ;;  %v319_v15 = vrot.slane %v310_v8, %v318_v9  ;;  %v327_v16 = vrot.slane %v310_v8, %v326_v10 }
  0x72   : > { %505 = vmatpush1.bf16.msra.mxu0 %v1320_v27  ;;  %548 = vmatpush1.bf16.msra.mxu1 %v1321_v28 }
  0x73   : > { %506 = vmatprep.subr.bf16.mxu0 %v1322_v29  ;;  %549 = vmatprep.subr.bf16.mxu1 %v1324_v30 }
  0x76   : > { %507 = vmatpush1.bf16.msra.mxu0 %v1326_v31  ;;  %550 = vmatpush1.bf16.msra.mxu1 %v1327_v32 }
  0x77   : > { %1160 = vmatprep.subr.bf16.mxu0 %v1328_v36  ;;  %1182 = vmatprep.subr.bf16.mxu1 %v1329_v37 }
  0x79   : > { %525 = vmatmul.mubr.bf16.vlgmr.msra.gmra.mxu0 %v277_v35  ;;  %568 = vmatmul.mubr.bf16.vlgmr.msra.gmra.mxu1 %v277_v35 }
  0x7a   : > { %1161 = vmatpush3.bf16.msra.mxu0 %v1330_v38  ;;  %1183 = vmatpush3.bf16.msra.mxu1 %v1331_v39 }
  0x7b   : > { %1162 = vmatprep.subr.bf16.mxu0 %v1332_v40  ;;  %1184 = vmatprep.subr.bf16.mxu1 %v1333_v41 }
  0x7e   : > { %1163 = vmatpush3.bf16.msra.mxu0 %v1334_v42  ;;  %1185 = vmatpush3.bf16.msra.mxu1 %v1335_v43 }
  0x7f   : > { %1164 = vmatprep.subr.bf16.mxu0 %v1336_v44  ;;  %1186 = vmatprep.subr.bf16.mxu1 %v1337_v45 }
  0x82   : > { %1165 = vmatpush3.bf16.msra.mxu0 %v1338_v46  ;;  %1187 = vmatpush3.bf16.msra.mxu1 %v1339_v47 }
  0x83   : > { %1166 = vmatprep.subr.bf16.mxu0 %v1340_v48  ;;  %1188 = vmatprep.subr.bf16.mxu1 %v1341_v49 }
  0x86   : > { %1167 = vmatpush3.bf16.msra.mxu0 %v1342_v50  ;;  %1189 = vmatpush3.bf16.msra.mxu1 %v1343_v51 }
  0x87   : > { %1168 = vmatprep.subr.bf16.mxu0 %v1344_v52  ;;  %1190 = vmatprep.subr.bf16.mxu1 %v1345_v53 }
  0x8a   : > { %1169 = vmatpush3.bf16.msra.mxu0 %v1346_v54  ;;  %1191 = vmatpush3.bf16.msra.mxu1 %v1347_v55 }
  0x8b   : > { %1170 = vmatprep.subr.bf16.mxu0 %v1348_v56  ;;  %1192 = vmatprep.subr.bf16.mxu1 %v1349_v57 }
  0x8e   : > { %1171 = vmatpush3.bf16.msra.mxu0 %v1350_v58  ;;  %1193 = vmatpush3.bf16.msra.mxu1 %v1351_v59 }
  0x8f   : > { %1172 = vmatprep.subr.bf16.mxu0 %v1352_v60  ;;  %1194 = vmatprep.subr.bf16.mxu1 %v1353_v61 }
  0x92   : > { %1173 = vmatpush3.bf16.msra.mxu0 %v1354_v62  ;;  %1195 = vmatpush3.bf16.msra.mxu1 %v1355_v63 }
  0x93   : > { %1174 = vmatprep.subr.bf16.mxu0 %v1356_v0  ;;  %1196 = vmatprep.subr.bf16.mxu1 %v1357_v1 }
  0x96   : > { %1175 = vmatpush3.bf16.msra.mxu0 %v1358_v2  ;;  %1197 = vmatpush3.bf16.msra.mxu1 %v1359_v3 }
 0x139   : > { %v526_v13 = vpop.f32.mrf.mxu0  ;;  %v569_v14 = vpop.f32.mrf.mxu1 }
 0x13a   : > { %v527_v17 = vadd.f32 %v526_v13, %v315_v11  ;;  %v570_v18 = vadd.f32 %v569_v14, %v323_v12  ;;  %v1120_v13 = vld [vmem:[%s1775_s4] ss:$0 sm:$0xff] }
 0x13b   : > { %v528_v19 = vpop.f32.mrf.mxu0  ;;  %v571_v20 = vpop.f32.mrf.mxu1 }
 0x13c   : > { %v586_v21 = vmul.f32 0.70710677, %v527_v17  ;;  %v588_v22 = vmul.f32 0.70710677, %v570_v18  ;;  %v529_v23 = vadd.f32 %v528_v19, %v319_v15  ;;  %v572_v24 = vadd.f32 %v571_v20, %v327_v16 }
 0x13d   : > { %v530_v25 = vpop.f32.mrf.mxu0  ;;  %v573_v26 = vpop.f32.mrf.mxu1  ;;  %v578_v45 = vmul.f32 0.5, %v527_v17  ;;  %v580_v63 = vmul.f32 0.5, %v570_v18 }
 0x13e   : > { %v531_v27 = vadd.f32 %v530_v25, %v315_v11  ;;  %v574_v28 = vadd.f32 %v573_v26, %v323_v12  ;;  %1360 = verf.f32 %v586_v21  ;;  %v587_v29 = vmul.f32 0.70710677, %v529_v23 }
 0x13f   : > { %v532_v30 = vpop.f32.mrf.mxu0  ;;  %v575_v31 = vpop.f32.mrf.mxu1  ;;  %1362 = verf.f32 %v588_v22  ;;  %v589_v32 = vmul.f32 0.70710677, %v572_v24  ;;  %v579_v46 = vmul.f32 0.5, %v529_v23  ;;  %v581_v59 = vmul.f32 0.5, %v572_v24 }
 0x140   : > { %v590_v33 = vmul.f32 0.70710677, %v531_v27  ;;  %1364 = verf.f32 %v587_v29  ;;  %v592_v34 = vmul.f32 0.70710677, %v574_v28  ;;  %v533_v35 = vadd.f32 %v532_v30, %v319_v15 }
 0x141   : > { %v576_v36 = vadd.f32 %v575_v31, %v327_v16  ;;  %1366 = verf.f32 %v589_v32  ;;  %v582_v52 = vmul.f32 0.5, %v531_v27  ;;  %v584_v56 = vmul.f32 0.5, %v574_v28 }
 0x142   : > { %1368 = verf.f32 %v590_v33  ;;  %v591_v37 = vmul.f32 0.70710677, %v533_v35  ;;  %v583_v57 = vmul.f32 0.5, %v533_v35 }
 0x143   : > { %1370 = verf.f32 %v592_v34  ;;  %v593_v38 = vmul.f32 0.70710677, %v576_v36  ;;  %v585_v61 = vmul.f32 0.5, %v576_v36 }
 0x144   : > { %1372 = verf.f32 %v591_v37 }
 0x145   : > { %1374 = verf.f32 %v593_v38 }
 0x14b   : > { %v1361_v39 = vpop.eup %1360 }
 0x14c   : > { %v1363_v40 = vpop.eup %1362  ;;  %v602_v50 = vadd.f32 1.0, %v1361_v39 }
 0x14d   : > { %v1365_v41 = vpop.eup %1364  ;;  %v604_v55 = vadd.f32 1.0, %v1363_v40 }
 0x14e   : > { %v1367_v42 = vpop.eup %1366  ;;  %v603_v47 = vadd.f32 1.0, %v1365_v41  ;;  %v610_v3 = vmul.f32 %v602_v50, %v578_v45 }
 0x14f   : > { %v1369_v43 = vpop.eup %1368  ;;  %v605_v51 = vadd.f32 1.0, %v1367_v42  ;;  %v612_v6 = vmul.f32 %v604_v55, %v580_v63 }
 0x150   : > { %v1371_v44 = vpop.eup %1370  ;;  %v606_v48 = vadd.f32 1.0, %v1369_v43  ;;  %v611_v0 = vmul.f32 %v603_v47, %v579_v46 }
 0x151   : > { %v1373_v49 = vpop.eup %1372  ;;  %v608_v53 = vadd.f32 1.0, %v1371_v44  ;;  %v613_v4 = vmul.f32 %v605_v51, %v581_v59 }
 0x152   : > { %v1375_v54 = vpop.eup %1374  ;;  %v607_v58 = vadd.f32 1.0, %v1373_v49  ;;  %v614_v60 = vmul.f32 %v606_v48, %v582_v52 }
 0x153   : > { %v609_v62 = vadd.f32 1.0, %v1375_v54  ;;  %v616_v1 = vmul.f32 %v608_v53, %v584_v56 }
 0x154   : > { %v615_v2 = vmul.f32 %v607_v58, %v583_v57  ;;  %v618_v8 = vpack.c.bf16 %v614_v60, %v610_v3 }
 0x155   : > { %v617_v5 = vmul.f32 %v609_v62, %v585_v61  ;;  %v620_v10 = vpack.c.bf16 %v616_v1, %v612_v6 }
 0x156   : > { %v619_v7 = vpack.c.bf16 %v615_v2, %v611_v0 }
 0x157   : > { %v621_v9 = vpack.c.bf16 %v617_v5, %v613_v4 }
 0x158   : > { %917 = vmatprep.mubr.bf16.mxu0 %v619_v7 }
 0x159   : > { %958 = vmatprep.mubr.bf16.mxu1 %v621_v9  ;;  %918 = vmatmul.mubr.bf16.vlgmr.msra.gmra.mxu0 %v618_v8 }
 0x15a   : > { %959 = vmatmul.mubr.bf16.vlgmr.msra.gmra.mxu1 %v620_v10 }
 0x219   : > { %v1176_v11 = vpop.f32.mrf.mxu0 }
 0x21a   : > { %v1198_v12 = vpop.f32.mrf.mxu1 }
 0x21b   : > { %v1177_v14 = vpop.f32.mrf.mxu0 }
 0x21c   : > { %v1178_v15 = vadd.f32 %v1177_v14, %v1176_v11  ;;  %v1199_v16 = vpop.f32.mrf.mxu1 }
 0x21d   : > { %v1179_v17 = vpop.f32.mrf.mxu0  ;;  %v1200_v19 = vadd.f32 %v1199_v16, %v1198_v12 }
 0x21e   : > { %v920_v18 = vadd.f32 %v1178_v15, %v1120_v13  ;;  %v1201_v20 = vpop.f32.mrf.mxu1 }
 0x21f   : > { %v1180_v21 = vpop.f32.mrf.mxu0 }
 0x220   : > { %v961_v22 = vadd.f32 %v1200_v19, %v920_v18  ;;  %v1181_v23 = vadd.f32 %v1180_v21, %v1179_v17  ;;  %v1202_v24 = vpop.f32.mrf.mxu1 }
 0x221   : > { %v1203_v26 = vadd.f32 %v1202_v24, %v1201_v20 }
 0x222   : > { %967 = vst [vmem:[%s271_s13] sm:$0xff] %v961_v22  ;;  %v923_v25 = vadd.f32 %v1181_v23, %v1120_v13 }
 0x224   : > { %v964_v27 = vadd.f32 %v1203_v26, %v923_v25 }
 0x226   : > { %968 = vst [vmem:[%s271_s13 + $0x8] sm:$0xff] %v964_v27 }
 0x227   : > { %1469 = shalt.err (!%p1466_p9)
}
 0x228   : > { %s1470_s6 = scalar_lea.hbm %s1728_s11, 256  ;;  %s1474_s10 = scalar_lea.hbm %s1776_s5, 512 }
 0x229   : > { %p1471_p13 = scmp.ne.s32.totalorder %s1728_s11, %s1470_s6  ;;  %p1475_p4 = scmp.lt.s32.totalorder %s1728_s11, %s1776_s5 }
 0x22a   : > { %p1476_p8 = scmp.lt.s32.totalorder %s1474_s10, %s1470_s6 }
 0x22b   : > { %p1472_p5 = pnand %p1471_p13, %p1792_p10 }
 0x22c   : > { %p1477_p7 = por %p1476_p8, %p1475_p4 }
 0x22d   : > { %p1473_p0 = pneg %p1472_p5 }
 0x22f   : > { %p1478_p11 = pnand %p1477_p7, %p1473_p0 }
 0x231   : > { %1481 = shalt.err (!%p1478_p11)
}
 0x232   : > { %s1537_s29 = smov 128   ;;  %s1538_s8 = smov 8  }
 0x233   : > { %1214 = dma.vmem_to_hbm [thread:$0]  (%p1792_p10), %s1723_s14, 256, %s1728_s11, %s970_s15, %s1537_s29, %s1537_s29, %s1538_s8  }
 0x234 PF: > { %s998_s9 = sand.u32 1, %s1512_s18   ;;  %p1793_p1 = scmp.ne.s32.totalorder %s1782_s25, 0 }
 0x235   : > { %p1794_p2 = scmp.ge.s32.totalorder %s1524_s21, 2  ;;  %s999_s16 = scalar_lea.sflag [#allocation4], %s998_s9 }
 0x237   : > { %p1228_p6 = pnand %p1794_p2, %p1793_p1 }
 0x239   : > { %p1229_p12 = pneg %p1228_p6 }
 0x23b   : > { %1507 = dma.done.wait (%p1229_p12), %s999_s16, 256  }
 0x23c   : > { %1509 = vsyncadd (%p1229_p12), %s999_s16, 4294967040  ;;  %p19_p3 = scmp.ge.s32.totalorder %s1641_s17, 4   ;;  %s1795_s18 = smov %s1516_s19 }
 0x23d   : > { %s1796_s19 = smov %s1520_s20  ;;  %s1797_s20 = smov %s1650_s28 }
 0x23e   : > { %s1798_s21 = smov %s1641_s17  ;;  %21 = sbr.rel (!%p19_p3) target bundleno = 6 (0x6), region = 93 }
 0x243   :  { %1004 = vsyncpa [#allocation3], 1 }
 0x244   :  { %1006 = vsyncpa [#allocation3 + $0x1], 1 }
 0x245   :  { %1007 = vsyncpa [#allocation6], 1 }
 0x246   :  { %1008 = vsyncpa [#allocation4], 1 }
 0x247   :  { %1010 = vsyncpa [#allocation4 + $0x1], 1 }

</bundles_post_ra>
